<compile_context>
chip_gen: v6e
topology: v6e:2x2x1
jax: 0.10.0
libtpu: 0.0.40
codegen_flags: <defaults>
</compile_context>

<pallas_src>
import functools

import jax
import jax.numpy as jnp
from jax.experimental import pallas as pl
from jax.experimental.pallas import tpu as pltpu


def _round_up(x, m):
    return (x + m - 1) // m * m


def _vmem_budget_bytes():
    """~75% of per-TensorCore VMEM (96 MiB on v5e/v6e, 48 MiB on v7x)."""
    phys = None
    try:
        info = pltpu.get_tpu_info()
        phys = int(getattr(info, "vmem_capacity_bytes", 0)) or None
    except Exception:
        phys = None
    kind = ""
    try:
        kind = jax.devices()[0].device_kind.lower()
    except Exception:
        pass
    if phys is None:
        phys = 64 * 2**20 if "v7" in kind else 128 * 2**20
    if "v7" in kind:
        phys = min(phys, 64 * 2**20)  # v7x VMEM is per-TensorCore 64 MiB
    return (phys * 3) // 4


# ---------------------------------------------------------------------------
# Kernels
# ---------------------------------------------------------------------------
def ffn_resident_kernel(x_ref, w1_ref, b1_ref, w2_ref, b2_ref, o_ref):
    # x_ref : [tm, Dp]   w1_ref: [Dp, Fp]   b1_ref: [1, Fp]
    # w2_ref: [Fp, Dp]   b2_ref: [1, Dp]    o_ref : [tm, Dp]
    # Weights are fully VMEM-resident; only x/o row tiles stream per grid step.
    h = jnp.dot(x_ref[...].astype(w1_ref.dtype), w1_ref[...],
                preferred_element_type=jnp.float32)
    h = jnp.maximum(h + b1_ref[...], 0.0)
    # Dropout: identity at inference (eval mode). No-op here.
    # TODO(synk): training-mode dropout (pltpu.prng_random_bits mask) omitted.
    o_ref[...] = (jnp.dot(h.astype(w2_ref.dtype), w2_ref[...],
                          preferred_element_type=jnp.float32)
                  + b2_ref[...]).astype(o_ref.dtype)


def ffn_streaming_kernel(x_ref, w1_ref, b1_ref, w2_ref, b2_ref, o_ref, acc_ref):
    # x_ref : [tm, Dp]   w1_ref: [Dp, tf]   b1_ref: [1, tf]
    # w2_ref: [tf, Dp]   b2_ref: [1, Dp]    o_ref : [tm, Dp]
    # acc_ref: [tm, Dp] f32 scratch, accumulated over the d_ff (j) grid axis.
    j = pl.program_id(1)

    @pl.when(j == 0)
    def _init():
        acc_ref[...] = jnp.zeros_like(acc_ref)

    h = jnp.dot(x_ref[...].astype(w1_ref.dtype), w1_ref[...],
                preferred_element_type=jnp.float32)
    h = jnp.maximum(h + b1_ref[...], 0.0)
    # Dropout: identity at inference (eval mode). No-op here.

    acc_ref[...] += jnp.dot(h.astype(w2_ref.dtype), w2_ref[...],
                            preferred_element_type=jnp.float32)

    @pl.when(j == pl.num_programs(1) - 1)
    def _finalize():
        o_ref[...] = (acc_ref[...] + b2_ref[...]).astype(o_ref.dtype)


# ---------------------------------------------------------------------------
# Wrapper
# ---------------------------------------------------------------------------
@functools.partial(jax.jit, static_argnames=("tm", "tf", "force_streaming"))
def positionwise_ffn(x, w1_t, b1, w2_t, b2, *, tm=256, tf=512,
                     force_streaming=False):
    """y = relu(x @ w1_t + b1) @ w2_t + b2  (dropout = identity, eval mode).

    x    : [B, S, d_model]
    w1_t : [d_model, d_ff]   (= W1.T of nn.Linear(d_model, d_ff))
    b1   : [d_ff]
    w2_t : [d_ff, d_model]   (= W2.T of nn.Linear(d_ff, d_model))
    b2   : [d_model]
    """
    B, S, d_model = x.shape
    d_ff = w1_t.shape[1]
    M = B * S

    x_isz = jnp.dtype(x.dtype).itemsize
    w_isz = jnp.dtype(w1_t.dtype).itemsize

    Dp = _round_up(d_model, 128)
    Fp128 = _round_up(d_ff, 128)

    # Row tile: multiple of 8 (f32 sublanes). Keep >= 2 row steps when M
    # allows so the 'parallel' axis can be split across v7x's 2 TensorCores.
    tm = max(8, (min(tm, _round_up(M, 8)) // 8) * 8)
    Mp = _round_up(M, tm)
    while Mp // tm < 2 and tm > 8:
        tm = max(8, (tm // 2 // 8) * 8)
        Mp = _round_up(M, tm)

    budget = _vmem_budget_bytes()

    # ---- Path selection: keep W1/W2 fully VMEM-resident when they fit. -----
    def resident_bytes(tm_):
        return (2 * Dp * Fp128 * w_isz      # W1 + W2 (single-buffered)
                + (Fp128 + Dp) * 4          # biases
                + 2 * tm_ * Dp * x_isz      # x tiles (double-buffered)
                + 2 * tm_ * Dp * x_isz      # out tiles (double-buffered)
                + tm_ * Fp128 * 4           # ReLU intermediate (f32)
                + tm_ * Dp * 4)             # second-matmul result (f32)

    def streaming_bytes(tm_, tf_):
        return (2 * tm_ * Dp * x_isz        # x tiles
                + 2 * tm_ * Dp * x_isz      # out tiles
                + 2 * Dp * tf_ * w_isz      # W1 slabs (streamed)
                + 2 * tf_ * Dp * w_isz      # W2 slabs (streamed)
                + 2 * tf_ * 4 + Dp * 4      # biases
                + tm_ * Dp * 4              # accumulator scratch
                + tm_ * tf_ * 4)            # ReLU intermediate

    use_resident = False
    if not force_streaming:
        tm_try = tm
        while True:
            if resident_bytes(tm_try) <= (budget * 9) // 10:
                use_resident = True
                tm = tm_try
                Mp = _round_up(M, tm)
                break
            if tm_try <= 64:
                break
            tm_try = max(8, (tm_try // 2 // 8) * 8)

    if use_resident:
        Fp = Fp128
        est = resident_bytes(tm)
    else:
        tf = max(128, (min(tf, Fp128) // 128) * 128)
        # Shrink tiles (tf first, then tm) until the working set fits.
        while streaming_bytes(tm, tf) > (budget * 9) // 10 and (tf > 128 or tm > 8):
            if tf > 128:
                tf = max(128, (tf // 2 // 128) * 128)
            else:
                tm = max(8, (tm // 2 // 8) * 8)
        Mp = _round_up(M, tm)
        Fp = _round_up(d_ff, tf)
        est = streaming_bytes(tm, tf)

    # ---- Conditional lane-dense padding (skipped for aligned shapes). ------
    x2d = x.reshape(M, d_model)
    if Mp != M or Dp != d_model:
        x2d = jnp.pad(x2d, ((0, Mp - M), (0, Dp - d_model)))
    w1p = w1_t if (Dp == d_model and Fp == d_ff) else jnp.pad(
        w1_t, ((0, Dp - d_model), (0, Fp - d_ff)))
    b1p = (b1 if Fp == d_ff else jnp.pad(b1, (0, Fp - d_ff))).reshape(1, Fp)
    w2p = w2_t if (Fp == d_ff and Dp == d_model) else jnp.pad(
        w2_t, ((0, Fp - d_ff), (0, Dp - d_model)))
    b2p = (b2 if Dp == d_model else jnp.pad(b2, (0, Dp - d_model))).reshape(1, Dp)

    vmem_limit = int(min(budget, max(2 * est, 32 * 2**20)))

    n_row_tiles = Mp // tm
    weight_bytes = (2 * Dp * Fp * w_isz if use_resident
                    else n_row_tiles * 2 * Dp * Fp * w_isz)
    cost = pl.CostEstimate(
        flops=4 * Mp * Dp * Fp,
        transcendentals=0,
        bytes_accessed=2 * Mp * Dp * x_isz + weight_bytes + (Fp + Dp) * 4,
    )

    if use_resident:
        out2d = pl.pallas_call(
            ffn_resident_kernel,
            out_shape=jax.ShapeDtypeStruct((Mp, Dp), x.dtype),
            grid_spec=pltpu.PrefetchScalarGridSpec(
                num_scalar_prefetch=0,
                grid=(n_row_tiles,),
                in_specs=[
                    pl.BlockSpec((tm, Dp), lambda i: (i, 0)),        # x row tile
                    pl.BlockSpec((Dp, Fp), lambda i: (0, 0),         # W1 resident
                                 pipeline_mode=pl.Buffered(1)),
                    pl.BlockSpec((1, Fp), lambda i: (0, 0),          # b1 resident
                                 pipeline_mode=pl.Buffered(1)),
                    pl.BlockSpec((Fp, Dp), lambda i: (0, 0),         # W2 resident
                                 pipeline_mode=pl.Buffered(1)),
                    pl.BlockSpec((1, Dp), lambda i: (0, 0),          # b2 resident
                                 pipeline_mode=pl.Buffered(1)),
                ],
                out_specs=pl.BlockSpec((tm, Dp), lambda i: (i, 0)),
            ),
            compiler_params=pltpu.CompilerParams(
                dimension_semantics=("parallel",),
                vmem_limit_bytes=vmem_limit,
            ),
            cost_estimate=cost,
        )(x2d, w1p, b1p, w2p, b2p)
    else:
        out2d = pl.pallas_call(
            ffn_streaming_kernel,
            out_shape=jax.ShapeDtypeStruct((Mp, Dp), x.dtype),
            grid_spec=pltpu.PrefetchScalarGridSpec(
                num_scalar_prefetch=0,
                grid=(n_row_tiles, Fp // tf),
                in_specs=[
                    pl.BlockSpec((tm, Dp), lambda i, j: (i, 0)),     # x row tile
                    pl.BlockSpec((Dp, tf), lambda i, j: (0, j)),     # W1 slab
                    pl.BlockSpec((1, tf), lambda i, j: (0, j)),      # b1 slab
                    pl.BlockSpec((tf, Dp), lambda i, j: (j, 0)),     # W2 slab
                    pl.BlockSpec((1, Dp), lambda i, j: (0, 0),       # b2 constant
                                 pipeline_mode=pl.Buffered(1)),
                ],
                out_specs=pl.BlockSpec((tm, Dp), lambda i, j: (i, 0)),
                scratch_shapes=[pltpu.VMEM((tm, Dp), jnp.float32)],
            ),
            compiler_params=pltpu.CompilerParams(
                dimension_semantics=("parallel", "arbitrary"),
                vmem_limit_bytes=vmem_limit,
            ),
            cost_estimate=cost,
        )(x2d, w1p, b1p, w2p, b2p)

    if Mp != M or Dp != d_model:
        out2d = out2d[:M, :d_model]
    return out2d.reshape(B, S, d_model)


def _reference(x, w1_t, b1, w2_t, b2):
    h = jnp.maximum(jnp.einsum("bsd,df->bsf", x, w1_t) + b1, 0.0)
    return jnp.einsum("bsf,fd->bsd", h, w2_t) + b2


if __name__ == "__main__":
    # Small shapes consistent with the module's forward.
    B, S, d_model, d_ff = 2, 8, 32, 256

    key = jax.random.PRNGKey(0)
    kx, kw1, kb1, kw2, kb2 = jax.random.split(key, 5)

    x = jax.random.normal(kx, (B, S, d_model), dtype=jnp.float32)

    # nn.Linear(d_model, d_ff): weight [d_ff, d_model], bias [d_ff].
    # We store pre-transposed weights (W^T) so the kernel does x @ W^T directly.
    w1 = jax.random.normal(kw1, (d_ff, d_model), dtype=jnp.float32) * (1.0 / d_model) ** 0.5
    b1 = jax.random.normal(kb1, (d_ff,), dtype=jnp.float32) * 0.01
    w2 = jax.random.normal(kw2, (d_model, d_ff), dtype=jnp.float32) * (1.0 / d_ff) ** 0.5
    b2 = jax.random.normal(kb2, (d_model,), dtype=jnp.float32) * 0.01

    w1_t = w1.T  # [d_model, d_ff]
    w2_t = w2.T  # [d_ff, d_model]

    ref = _reference(x, w1_t, b1, w2_t, b2)

    # Fast path: weights fully VMEM-resident, 1-D 'parallel' row grid.
    out = positionwise_ffn(x, w1_t, b1, w2_t, b2)
    jax.block_until_ready(out)
    assert out.shape == (B, S, d_model)
    assert jnp.allclose(out, ref, atol=5e-3, rtol=5e-3), \
        float(jnp.max(jnp.abs(out - ref)))

    # Streaming path: exercises the 2-D grid with accumulator init/finalize.
    out_s = positionwise_ffn(x, w1_t, b1, w2_t, b2, tm=8, tf=128,
                             force_streaming=True)
    jax.block_until_ready(out_s)
    assert jnp.allclose(out_s, ref, atol=5e-3, rtol=5e-3), \
        float(jnp.max(jnp.abs(out_s - ref)))

    print("KERNEL_OK")
</pallas_src>

<mosaic_0001>
module attributes {stable_mosaic.version = 11 : i64} {
  func.func @ffn_resident_kernel(%arg0: i32, %arg1: memref<8x128xf32, #tpu.memory_space<vmem>>, %arg2: memref<128x256xf32, #tpu.memory_space<vmem>>, %arg3: memref<1x256xf32, #tpu.memory_space<vmem>>, %arg4: memref<256x128xf32, #tpu.memory_space<vmem>>, %arg5: memref<1x128xf32, #tpu.memory_space<vmem>>, %arg6: memref<8x128xf32, #tpu.memory_space<vmem>>) attributes {dimension_semantics = [#tpu.dimension_semantics<parallel>], iteration_bounds = array<i64: 2>, scalar_prefetch = 0 : i64, scratch_operands = 0 : i64, tpu.core_type = #tpu.core_type<tc>, window_params = [{transform_indices = @transform_0, window_bounds = array<i64: 8, 128>}, {pipeline_mode = #tpu.pipeline_mode<synchronous>, transform_indices = @transform_1, window_bounds = array<i64: 128, 256>}, {pipeline_mode = #tpu.pipeline_mode<synchronous>, transform_indices = @transform_2, window_bounds = array<i64: 1, 256>}, {pipeline_mode = #tpu.pipeline_mode<synchronous>, transform_indices = @transform_3, window_bounds = array<i64: 256, 128>}, {pipeline_mode = #tpu.pipeline_mode<synchronous>, transform_indices = @transform_4, window_bounds = array<i64: 1, 128>}, {transform_indices = @transform_5, window_bounds = array<i64: 8, 128>}]} {
    %c0 = arith.constant 0 : index
    %c0_0 = arith.constant 0 : index
    %0 = vector.load %arg1[%c0, %c0_0] : memref<8x128xf32, #tpu.memory_space<vmem>>, vector<8x128xf32>
    %c0_1 = arith.constant 0 : index
    %c0_2 = arith.constant 0 : index
    %1 = vector.load %arg2[%c0_1, %c0_2] : memref<128x256xf32, #tpu.memory_space<vmem>>, vector<128x256xf32>
    %cst = arith.constant dense<0.000000e+00> : vector<8x256xf32>
    %2 = tpu.matmul %0, %1, %cst {dimension_numbers = #tpu.dot_dimension_numbers<[1], [0], [0], [1], [0, 0, 1, 1], [], []>} : vector<8x128xf32>, vector<128x256xf32>, vector<8x256xf32> -> vector<8x256xf32>
    %c0_3 = arith.constant 0 : index
    %c0_4 = arith.constant 0 : index
    %3 = vector.load %arg3[%c0_3, %c0_4] : memref<1x256xf32, #tpu.memory_space<vmem>>, vector<1x256xf32>
    %4 = vector.broadcast %3 : vector<1x256xf32> to vector<8x256xf32>
    %5 = arith.addf %2, %4 : vector<8x256xf32>
    %cst_5 = arith.constant 0.000000e+00 : f32
    %6 = vector.broadcast %cst_5 : f32 to vector<8x256xf32>
    %7 = arith.maximumf %5, %6 : vector<8x256xf32>
    %c0_6 = arith.constant 0 : index
    %c0_7 = arith.constant 0 : index
    %8 = vector.load %arg4[%c0_6, %c0_7] : memref<256x128xf32, #tpu.memory_space<vmem>>, vector<256x128xf32>
    %cst_8 = arith.constant dense<0.000000e+00> : vector<8x128xf32>
    %9 = tpu.matmul %7, %8, %cst_8 {dimension_numbers = #tpu.dot_dimension_numbers<[1], [0], [0], [1], [0, 0, 1, 1], [], []>} : vector<8x256xf32>, vector<256x128xf32>, vector<8x128xf32> -> vector<8x128xf32>
    %c0_9 = arith.constant 0 : index
    %c0_10 = arith.constant 0 : index
    %10 = vector.load %arg5[%c0_9, %c0_10] : memref<1x128xf32, #tpu.memory_space<vmem>>, vector<1x128xf32>
    %11 = vector.broadcast %10 : vector<1x128xf32> to vector<8x128xf32>
    %12 = arith.addf %9, %11 : vector<8x128xf32>
    %c0_11 = arith.constant 0 : index
    %c0_12 = arith.constant 0 : index
    %13 = vector.load %arg6[%c0_11, %c0_12] : memref<8x128xf32, #tpu.memory_space<vmem>>, vector<8x128xf32>
    tpu.vector_store %arg6[%c0_11, %c0_12], %12 {strides = array<i32>} : memref<8x128xf32, #tpu.memory_space<vmem>>, vector<8x128xf32>,
    return
  }
  func.func @transform_0(%arg0: i32) -> (i32, i32) {
    %c0_i32 = arith.constant 0 : i32
    %c0_i32_0 = arith.constant 0 : i32
    return %arg0, %c0_i32 : i32, i32
  }
  func.func @transform_1(%arg0: i32) -> (i32, i32) {
    %c0_i32 = arith.constant 0 : i32
    %c0_i32_0 = arith.constant 0 : i32
    %c0_i32_1 = arith.constant 0 : i32
    return %c0_i32, %c0_i32_0 : i32, i32
  }
  func.func @transform_2(%arg0: i32) -> (i32, i32) {
    %c0_i32 = arith.constant 0 : i32
    %c0_i32_0 = arith.constant 0 : i32
    %c0_i32_1 = arith.constant 0 : i32
    return %c0_i32, %c0_i32_0 : i32, i32
  }
  func.func @transform_3(%arg0: i32) -> (i32, i32) {
    %c0_i32 = arith.constant 0 : i32
    %c0_i32_0 = arith.constant 0 : i32
    %c0_i32_1 = arith.constant 0 : i32
    return %c0_i32, %c0_i32_0 : i32, i32
  }
  func.func @transform_4(%arg0: i32) -> (i32, i32) {
    %c0_i32 = arith.constant 0 : i32
    %c0_i32_0 = arith.constant 0 : i32
    %c0_i32_1 = arith.constant 0 : i32
    return %c0_i32, %c0_i32_0 : i32, i32
  }
  func.func @transform_5(%arg0: i32) -> (i32, i32) {
    %c0_i32 = arith.constant 0 : i32
    %c0_i32_0 = arith.constant 0 : i32
    return %arg0, %c0_i32 : i32, i32
  }
}

</mosaic_0001>

<bundles_post_ra>
// kernel: positionwise_ffn.1
= control target key start
LH: loop header
LB: loop body
LE: loop exit
PB: predicated region body
PF: predicated region fallthrough
CT: control target
= control target key end

     0   :  { %s594_s18 = smov 0   ;;  %s826_s0 = inlined_call_operand.vmem [shape: f32[16,128], index: 0, kind: input, shape index: {}]   ;;  %s827_s1 = inlined_call_operand.vmem [shape: f32[128,256], index: 1, kind: input, shape index: {}]   ;;  %s828_s2 = inlined_call_operand.vmem [shape: f32[1,256], index: 2, kind: input, shape index: {}]   ;;  %s829_s3 = inlined_call_operand.vmem [shape: f32[256,128], index: 3, kind: input, shape index: {}]   ;;  %s830_s4 = inlined_call_operand.vmem [shape: f32[1,128], index: 4, kind: input, shape index: {}]   ;;  %s831_s5 = inlined_call_operand.vmem [shape: f32[16,128], index: 5, kind: output, shape index: {}]  }
   0x1 LB: > { %s501_s19 = sadd.s32 4294967295, %s561_s18   ;;  %p505_p0 = scmp.ge.s32.totalorder %s561_s18, 1  ;;  %s561_s18 = sphi %s594_s18, %s15_s18  }
   0x2   : > { %p186_p1 = scmp.lt.s32.totalorder %s561_s18, 3 }
   0x4   : > { %p187_p2 = pnand %p505_p0, %p186_p1 }
   0x5   : > { %p682_p3 = scmp.lt.s32.totalorder (!%p187_p2), %s501_s19, 1 }
   0x6   : > { %190 = sbr.rel (%p187_p2) target bundleno = 444 (0x1bc), region = 40 }
   0xb   : > { %v252_v0 = vld [vmem:[%s827_s1 + $0xf8] sm:$0xff]  ;;  %v251_v1 = vld [vmem:[%s827_s1 + $0xf0] sm:$0xff]  ;;  %v250_v2 = vld [vmem:[%s827_s1 + $0xe8] sm:$0xff]  ;;  %v563_v4 = vmov 0.0   ;;  %s834_s19 = smov (!%p682_p3, %s501_s19), 1 }
   0xc   : > { %265 = vmatprep.subr.mxu0 %v252_v0  ;;  %v249_v3 = vld [vmem:[%s827_s1 + $0xe0] sm:$0xff]  ;;  %329 = vmatprep.mubr.f32.mxu0 %v563_v4  ;;  %v248_v5 = vld [vmem:[%s827_s1 + $0xd8] sm:$0xff]  ;;  %v247_v6 = vld [vmem:[%s827_s1 + $0xd0] sm:$0xff]  ;;  %s506_s11 = sshll.u32 %s834_s19, 3 }
   0xd   : > { %266 = vmatpush1.msra.mxu0 %v251_v1  ;;  %v246_v7 = vld [vmem:[%s827_s1 + $0xc8] sm:$0xff]  ;;  %v245_v8 = vld [vmem:[%s827_s1 + $0xc0] sm:$0xff]  ;;  %v244_v9 = vld [vmem:[%s827_s1 + $0xb8] sm:$0xff]  ;;  %s215_s28 = scalar_lea.vmem %s826_s0, %s506_s11  ;;  %s219_s23 = scalar_lea.vmem %s831_s5, %s506_s11 }
   0xe   : > { %267 = vmatprep.subr.mxu0 %v250_v2  ;;  %v243_v10 = vld [vmem:[%s827_s1 + $0xb0] sm:$0xff]  ;;  %v242_v11 = vld [vmem:[%s827_s1 + $0xa8] sm:$0xff]  ;;  %v241_v12 = vld [vmem:[%s827_s1 + $0xa0] sm:$0xff]  ;;  %v255_v2 = vlaneseq }
   0xf   : > { %268 = vmatpush1.msra.mxu0 %v249_v3  ;;  %v240_v13 = vld [vmem:[%s827_s1 + $0x98] sm:$0xff]  ;;  %v239_v14 = vld [vmem:[%s827_s1 + $0x90] sm:$0xff]  ;;  %v238_v18 = vld [vmem:[%s827_s1 + $0x88] sm:$0xff] }
  0x10   : > { %269 = vmatprep.subr.mxu0 %v248_v5  ;;  %v369_v15 = vld [vmem:[%s829_s3 + $0xf8] sm:$0xff]  ;;  %v368_v17 = vld [vmem:[%s829_s3 + $0xf0] sm:$0xff]  ;;  %v237_v20 = vld [vmem:[%s827_s1 + $0x80] sm:$0xff]  ;;  %v256_v3 = vshrl.u32 %v255_v2, 7 }
  0x11   : > { %270 = vmatpush1.msra.mxu0 %v247_v6  ;;  %v353_v16 = vld [vmem:[%s829_s3 + $0x78] sm:$0xff]  ;;  %511 = vmatprep.subr.mxu1 %v369_v15  ;;  %v352_v19 = vld [vmem:[%s829_s3 + $0x70] sm:$0xff]  ;;  %v367_v21 = vld [vmem:[%s829_s3 + $0xe8] sm:$0xff] }
  0x12   : > { %271 = vmatprep.subr.mxu0 %v246_v7  ;;  %512 = vmatpush3.msra.mxu1 %v353_v16  ;;  %v236_v22 = vld [vmem:[%s827_s1 + $0x78] sm:$0xff]  ;;  %v351_v23 = vld [vmem:[%s829_s3 + $0x68] sm:$0xff]  ;;  %v235_v24 = vld [vmem:[%s827_s1 + $0x70] sm:$0xff]  ;;  %v257_v4 = vsub.s32 0, %v256_v3  ;;  %v261_v6 = vsub.s32 1, %v256_v3 }
  0x13   : > { %272 = vmatpush1.msra.mxu0 %v245_v8  ;;  %513 = vmatprep.subr.mxu1 %v368_v17  ;;  %v366_v25 = vld [vmem:[%s829_s3 + $0xe0] sm:$0xff]  ;;  %v234_v26 = vld [vmem:[%s827_s1 + $0x68] sm:$0xff]  ;;  %v365_v29 = vld [vmem:[%s829_s3 + $0xd8] sm:$0xff] }
  0x14   : > { %273 = vmatprep.subr.mxu0 %v244_v9  ;;  %514 = vmatpush3.msra.mxu1 %v352_v19  ;;  %v350_v27 = vld [vmem:[%s829_s3 + $0x60] sm:$0xff]  ;;  %v232_v30 = vld [vmem:[%s827_s1 + $0x58] sm:$0xff]  ;;  %v231_v32 = vld [vmem:[%s827_s1 + $0x50] sm:$0xff] }
  0x15   : > { %274 = vmatpush1.msra.mxu0 %v243_v10  ;;  %515 = vmatprep.subr.mxu1 %v367_v21  ;;  %v233_v28 = vld [vmem:[%s827_s1 + $0x60] sm:$0xff]  ;;  %v349_v31 = vld [vmem:[%s829_s3 + $0x58] sm:$0xff]  ;;  %v364_v33 = vld [vmem:[%s829_s3 + $0xd0] sm:$0xff] }
  0x16   : > { %275 = vmatprep.subr.mxu0 %v242_v11  ;;  %516 = vmatpush3.msra.mxu1 %v351_v23  ;;  %v230_v34 = vld [vmem:[%s827_s1 + $0x48] sm:$0xff]  ;;  %v348_v35 = vld [vmem:[%s829_s3 + $0x50] sm:$0xff]  ;;  %v229_v36 = vld [vmem:[%s827_s1 + $0x40] sm:$0xff] }
  0x17   : > { %276 = vmatpush1.msra.mxu0 %v241_v12  ;;  %517 = vmatprep.subr.mxu1 %v366_v25  ;;  %v363_v37 = vld [vmem:[%s829_s3 + $0xc8] sm:$0xff]  ;;  %v228_v38 = vld [vmem:[%s827_s1 + $0x38] sm:$0xff]  ;;  %v227_v40 = vld [vmem:[%s827_s1 + $0x30] sm:$0xff] }
  0x18   : > { %277 = vmatprep.subr.mxu0 %v240_v13  ;;  %518 = vmatpush3.msra.mxu1 %v350_v27  ;;  %v347_v39 = vld [vmem:[%s829_s3 + $0x48] sm:$0xff]  ;;  %v362_v41 = vld [vmem:[%s829_s3 + $0xc0] sm:$0xff]  ;;  %v361_v45 = vld [vmem:[%s829_s3 + $0xb8] sm:$0xff] }
  0x19   : > { %278 = vmatpush1.msra.mxu0 %v239_v14  ;;  %519 = vmatprep.subr.mxu1 %v365_v29  ;;  %v226_v42 = vld [vmem:[%s827_s1 + $0x28] sm:$0xff]  ;;  %v346_v43 = vld [vmem:[%s829_s3 + $0x40] sm:$0xff]  ;;  %v224_v46 = vld [vmem:[%s827_s1 + $0x18] sm:$0xff] }
  0x1a   : > { %279 = vmatprep.subr.mxu0 %v238_v18  ;;  %520 = vmatpush3.msra.mxu1 %v349_v31  ;;  %v225_v44 = vld [vmem:[%s827_s1 + $0x20] sm:$0xff]  ;;  %v345_v47 = vld [vmem:[%s829_s3 + $0x38] sm:$0xff]  ;;  %v223_v48 = vld [vmem:[%s827_s1 + $0x10] sm:$0xff] }
  0x1b   : > { %280 = vmatpush1.msra.mxu0 %v237_v20  ;;  %521 = vmatprep.subr.mxu1 %v364_v33  ;;  %v360_v49 = vld [vmem:[%s829_s3 + $0xb0] sm:$0xff]  ;;  %v222_v50 = vld [vmem:[%s827_s1 + $0x8] sm:$0xff]  ;;  %v221_v52 = vld [vmem:[%s827_s1] sm:$0xff] }
  0x1c   : > { %281 = vmatprep.subr.mxu0 %v236_v22  ;;  %522 = vmatpush3.msra.mxu1 %v348_v35  ;;  %v344_v51 = vld [vmem:[%s829_s3 + $0x30] sm:$0xff]  ;;  %v359_v53 = vld [vmem:[%s829_s3 + $0xa8] sm:$0xff]  ;;  %v220_v54 = vld [vmem:[%s215_s28] sm:$0xff] }
  0x1d   : > { %282 = vmatpush1.msra.mxu0 %v235_v24  ;;  %523 = vmatprep.subr.mxu1 %v363_v37  ;;  %v343_v55 = vld [vmem:[%s829_s3 + $0x28] sm:$0xff]  ;;  %v358_v56 = vld [vmem:[%s829_s3 + $0xa0] sm:$0xff]  ;;  %v357_v58 = vld [vmem:[%s829_s3 + $0x98] sm:$0xff] }
  0x1e   : > { %283 = vmatprep.subr.mxu0 %v234_v26  ;;  %524 = vmatpush3.msra.mxu1 %v347_v39  ;;  %v342_v57 = vld [vmem:[%s829_s3 + $0x20] sm:$0xff]  ;;  %v341_v59 = vld [vmem:[%s829_s3 + $0x18] sm:$0xff]  ;;  %v356_v60 = vld [vmem:[%s829_s3 + $0x90] sm:$0xff] }
  0x1f   : > { %284 = vmatpush1.msra.mxu0 %v233_v28  ;;  %525 = vmatprep.subr.mxu1 %v362_v41  ;;  %v340_v61 = vld [vmem:[%s829_s3 + $0x10] sm:$0xff]  ;;  %v355_v62 = vld [vmem:[%s829_s3 + $0x88] sm:$0xff]  ;;  %v354_v0 = vld [vmem:[%s829_s3 + $0x80] sm:$0xff] }
  0x20   : > { %285 = vmatprep.subr.mxu0 %v232_v30  ;;  %526 = vmatpush3.msra.mxu1 %v346_v43  ;;  %v339_v63 = vld [vmem:[%s829_s3 + $0x8] sm:$0xff]  ;;  %v338_v1 = vld [vmem:[%s829_s3] sm:$0xff] }
  0x21   : > { %286 = vmatpush1.msra.mxu0 %v231_v32  ;;  %527 = vmatprep.subr.mxu1 %v361_v45  ;;  %v253_v5 = vld [vmem:[%s828_s2] sm:$0x3] }
  0x22   : > { %287 = vmatprep.subr.mxu0 %v230_v34  ;;  %528 = vmatpush3.msra.mxu1 %v345_v47  ;;  %v258_v7 = vrot.slane %v253_v5, %v257_v4  ;;  %v262_v8 = vrot.slane %v253_v5, %v261_v6  ;;  %v508_v16 = vld [vmem:[%s830_s4] ss:$0 sm:$0xff] }
  0x23   : > { %288 = vmatpush1.msra.mxu0 %v229_v36  ;;  %529 = vmatprep.subr.mxu1 %v360_v49 }
  0x24   : > { %289 = vmatprep.subr.mxu0 %v228_v38  ;;  %530 = vmatpush3.msra.mxu1 %v344_v51 }
  0x25   : > { %290 = vmatpush1.msra.mxu0 %v227_v40  ;;  %531 = vmatprep.subr.mxu1 %v359_v53 }
  0x26   : > { %291 = vmatprep.subr.mxu0 %v226_v42  ;;  %532 = vmatpush3.msra.mxu1 %v343_v55 }
  0x27   : > { %292 = vmatpush1.msra.mxu0 %v225_v44  ;;  %533 = vmatprep.subr.mxu1 %v358_v56 }
  0x28   : > { %293 = vmatprep.subr.mxu0 %v224_v46  ;;  %534 = vmatpush3.msra.mxu1 %v342_v57 }
  0x29   : > { %294 = vmatpush1.msra.mxu0 %v223_v48  ;;  %535 = vmatprep.subr.mxu1 %v357_v58 }
  0x2a   : > { %295 = vmatprep.subr.mxu0 %v222_v50  ;;  %536 = vmatpush3.msra.mxu1 %v341_v59 }
  0x2b   : > { %296 = vmatpush1.msra.mxu0 %v221_v52  ;;  %537 = vmatprep.subr.mxu1 %v356_v60 }
  0x2c   : > { %330 = vmatmul.mubr.f32.vlgmr.msra.gmra.mxu0 %v220_v54  ;;  %538 = vmatpush3.msra.mxu1 %v340_v61 }
  0x2d   : > { %539 = vmatprep.subr.mxu1 %v355_v62 }
  0x2e   : > { %540 = vmatpush3.msra.mxu1 %v339_v63 }
  0x2f   : > { %541 = vmatprep.subr.mxu1 %v354_v0 }
  0x30   : > { %542 = vmatpush3.msra.mxu1 %v338_v1 }
  0xec   : > { %v331_v9 = vpop.f32.mrf.mxu0 }
  0xed   : > { %v332_v10 = vadd.f32 %v331_v9, %v258_v7 }
  0xee   : > { %v333_v11 = vpop.f32.mrf.mxu0 }
  0xef   : > { %v334_v12 = vadd.f32 %v333_v11, %v262_v8  ;;  %v336_v14 = vmax.f32 %v332_v10, 0.0 }
  0xf1   : > { %v337_v13 = vmax.f32 %v334_v12, 0.0 }
  0xf3   : > { %441 = vmatprep.mubr.f32.mxu1 %v337_v13 }
  0xf4   : > { %442 = vmatmul.mubr.f32.vlgmr.msra.gmra.mxu1 %v336_v14 }
 0x1b4   : > { %v543_v15 = vpop.f32.mrf.mxu1 }
 0x1b6   : > { %v544_v17 = vpop.f32.mrf.mxu1 }
 0x1b7   : > { %v545_v18 = vadd.f32 %v544_v17, %v543_v15 }
 0x1b9   : > { %v444_v19 = vadd.f32 %v545_v18, %v508_v16 }
 0x1bb   : > { %447 = vst [vmem:[%s219_s23] sm:$0xff] %v444_v19 }
 0x1bc PF: > { %s15_s18 = sadd.s32 1, %s561_s18  }
 0x1bd   : > { %p12_p4 = scmp.ge.s32.totalorder %s15_s18, 4  }
 0x1bf   :  { %14 = sbr.rel (!%p12_p4) target bundleno = 1 (0x1), region = 70 }

</bundles_post_ra>
